<compile_context>
chip_gen: v7x
topology: tpu7x:2x2x1
jax: 0.10.0
libtpu: 0.0.40
codegen_flags: <defaults>
</compile_context>

<pallas_src>
import math

import numpy as np
import jax
import jax.numpy as jnp
from jax.experimental import pallas as pl
from jax.experimental.pallas import tpu as pltpu  # noqa: F401  (TPU backend)

B = 2                         # batch
C_IN = 3                      # image channels
IMG = 16                      # image H = W
P = 8                         # patch size
NP = (IMG // P) ** 2          # number of patches = 4
N = NP + 1                    # +1 cls token = 5
BN = B * N                    # flattened token count = 10
D = 32                        # embed dim
NH = 4                        # attention heads
DH = D // NH                  # head dim = 8
MLP = 4 * D                   # mlp hidden = 128
NUM_CLASSES = 4
NUM_CENTERS = 1               # ARPL Dist num_centers
LN_EPS = 1e-6
CPP = C_IN * P * P            # im2col width = 192
NEG_INF = -1e30

# ---- packed-parameter slab layouts ---------------------------------------- #
# slab32: width D = 32 lanes, everything whose natural width is <= D.
R_PATCHW = 0                  # CPP rows : patch-embed weight (CPP, D)
R_W2 = R_PATCHW + CPP         # 192, MLP rows : mlp down-proj (MLP, D)
R_BASE = R_W2 + MLP           # 320, BN rows  : cls/pos/patch-bias baked tokens
R_LN1G, R_LN1B = 336, 337
R_LN2G, R_LN2B = 338, 339
R_LNFG, R_LNFB = 340, 341
R_BATTN = 342                 # bo + sum_h bv_h @ wo_h
R_B2 = 343
R_PTS = 344                   # NUM_CLASSES rows : (1 + 2/D) * points
R_C2 = 348                    # 1 row, cols [0:K] : |points|^2 / D
R_MASK = 352                  # NH*BN rows, cols [0:BN] : additive batch mask
SLAB32_ROWS = R_MASK + NH * BN            # 392

# slabw: wide weights (first dim D) and wide bias rows.
QKVO_COLS = 2 * D + NH * D    # 192 : fused [q | k | v@wo] projection
C_W1 = 256                    # w1 at lanes [256, 384)  (128-aligned start)
R_BQK = 32                    # 1 row, cols [0:2D] : [bq*scale | bk]
R_B1 = 33                     # 1 row, cols [0:MLP]
SLABW_ROWS = 40
SLABW_COLS = C_W1 + MLP       # 384


def _ln(x, g, b):
    mu = jnp.mean(x, axis=-1, keepdims=True)
    var = jnp.mean((x - mu) ** 2, axis=-1, keepdims=True)
    return (x - mu) * jax.lax.rsqrt(var + LN_EPS) * g + b


# --------------------------------------------------------------------------- #
# The fused kernel: patch-embed -> +cls/pos -> MHSA -> MLP -> final LN (cls)
# -> ARPL reciprocal-point logits.  Single program, everything in VMEM,
# three input DMAs (data + 2 parameter slabs), one tiny output store.
# --------------------------------------------------------------------------- #
def _fused_vit_arpl_kernel(xpat_ref, slab32_ref, slabw_ref, logits_ref):
    # ---- unpack parameter slabs (static slices; big blocks are 8/128-aligned)
    patch_w = slab32_ref[R_PATCHW:R_PATCHW + CPP, :]        # (CPP, D)
    w2 = slab32_ref[R_W2:R_W2 + MLP, :]                     # (MLP, D)
    base = slab32_ref[R_BASE:R_BASE + BN, :]                # (BN, D)
    ln1_g = slab32_ref[R_LN1G:R_LN1G + 1, :]
    ln1_b = slab32_ref[R_LN1B:R_LN1B + 1, :]
    ln2_g = slab32_ref[R_LN2G:R_LN2G + 1, :]
    ln2_b = slab32_ref[R_LN2B:R_LN2B + 1, :]
    lnf_g = slab32_ref[R_LNFG:R_LNFG + 1, :]
    lnf_b = slab32_ref[R_LNFB:R_LNFB + 1, :]
    battn = slab32_ref[R_BATTN:R_BATTN + 1, :]              # (1, D)
    b2 = slab32_ref[R_B2:R_B2 + 1, :]                       # (1, D)
    pts_s = slab32_ref[R_PTS:R_PTS + NUM_CLASSES, :]        # (K, D), pre-scaled
    c2s = slab32_ref[R_C2:R_C2 + 1, 0:NUM_CLASSES]          # (1, K) = |pts|^2/D
    mask = slab32_ref[R_MASK:R_MASK + NH * BN, 0:BN]        # (NH*BN, BN) additive

    wqkvo = slabw_ref[0:D, 0:QKVO_COLS]                     # (D, 2D + NH*D)
    w1 = slabw_ref[0:D, C_W1:C_W1 + MLP]                    # (D, MLP)
    bqk = slabw_ref[R_BQK:R_BQK + 1, 0:2 * D]               # (1, 2D)
    b1 = slabw_ref[R_B1:R_B1 + 1, 0:MLP]                    # (1, MLP)

    # ---- patch embedding on the real patch rows only; cls/pos/conv-bias are
    #      baked into `base` (cls rows first in the flattened token slab). ----
    pe = jnp.dot(xpat_ref[...], patch_w,
                 preferred_element_type=jnp.float32)        # (B*NP, D)
    x = base + jnp.concatenate(
        [jnp.zeros((B, D), jnp.float32), pe], axis=0)       # (BN, D)

    # ---- MHSA: fused [q | k | v@wo] projection (softmax scale pre-folded) ---
    h = _ln(x, ln1_g, ln1_b)
    proj = jnp.dot(h, wqkvo, preferred_element_type=jnp.float32)   # (BN, 192)
    qk = proj[:, 0:2 * D] + bqk
    q = qk[:, 0:D]                                          # already * 1/sqrt(DH)
    k = qk[:, D:2 * D]
    vo = proj[:, 2 * D:2 * D + NH * D]                      # (BN, NH*D)

    # All-head scores stacked along sublanes -> ONE masked softmax.
    s_cat = jnp.concatenate(
        [jnp.einsum("qd,kd->qk",
                    q[:, hh * DH:(hh + 1) * DH],
                    k[:, hh * DH:(hh + 1) * DH],
                    preferred_element_type=jnp.float32)
         for hh in range(NH)], axis=0)                      # (NH*BN, BN)
    s_cat = s_cat + mask                                    # block-diag batch mask
    s_cat = s_cat - jnp.max(s_cat, axis=-1, keepdims=True)
    e = jnp.exp(s_cat)
    p_cat = e * pl.reciprocal(jnp.sum(e, axis=-1, keepdims=True), approx=True)

    attn = jnp.zeros((BN, D), jnp.float32)
    for hh in range(NH):                      # wo already folded into vo
        attn = attn + jnp.dot(p_cat[hh * BN:(hh + 1) * BN, :],
                              vo[:, hh * D:(hh + 1) * D],
                              preferred_element_type=jnp.float32)
    x = x + attn + battn                      # battn = bo + sum_h bv_h @ wo_h

    # ---- MLP ----------------------------------------------------------------
    h2 = _ln(x, ln2_g, ln2_b)
    m = jnp.dot(h2, w1, preferred_element_type=jnp.float32) + b1
    # TODO(synk): PyTorch nn.GELU defaults to exact erf; tanh approximation used
    # here (and in the reference) for a guaranteed Mosaic lowering.
    m = jax.nn.gelu(m, approximate=True)
    m = jnp.dot(m, w2, preferred_element_type=jnp.float32) + b2
    x = x + m

    # ---- final LN on cls rows only + ARPL reciprocal-point head -------------
    # logits = dist_l2 - dist_dot = |f|^2/D + |c|^2/D - (1 + 2/D) * f @ c^T
    feats = _ln(x[0:B, :], lnf_g, lnf_b)                    # (B, D)
    dots = jnp.einsum("bd,kd->bk", feats, pts_s,
                      preferred_element_type=jnp.float32)   # (B, K), pre-scaled pts
    f2 = jnp.sum(feats * feats, axis=-1, keepdims=True) * (1.0 / D)
    # NUM_CENTERS == 1, so torch's reshape([-1, C, 1]).mean(2) is the identity.
    logits_ref[...] = f2 + c2s - dots


# --------------------------------------------------------------------------- #
# One-time parameter re-layout (hoisted out of the per-call path): builds the
# two tile-aligned parameter slabs consumed by the kernel.
# --------------------------------------------------------------------------- #
def prepare_params(p):
    scale = 1.0 / math.sqrt(DH)

    # Fused [q | k | v@wo] projection; softmax scale folded into q weight/bias.
    wq = jnp.transpose(p["wq"], (1, 0, 2)).reshape(D, D) * scale
    wk = jnp.transpose(p["wk"], (1, 0, 2)).reshape(D, D)
    wvo = jnp.concatenate([p["wv"][h] @ p["wo"][h] for h in range(NH)], axis=1)
    wqkvo = jnp.concatenate([wq, wk, wvo], axis=1)                  # (D, 2D+NH*D)
    bq = jnp.transpose(p["bq"], (1, 0, 2)).reshape(1, D) * scale
    bk = jnp.transpose(p["bk"], (1, 0, 2)).reshape(1, D)
    bqk = jnp.concatenate([bq, bk], axis=1)[0]                      # (2D,)
    # bv folded through wo (softmax rows sum to 1) and merged with bo.
    battn = (p["bo"] + jnp.einsum("hxd,hde->xe", p["bv"], p["wo"]))[0]   # (D,)

    # Baked token base: cls+pos for the cls rows, pos+conv-bias for patch rows.
    pos = p["pos"][0]
    cls_rows = jnp.broadcast_to(p["cls"].reshape(1, D) + pos[0:1, :], (B, D))
    patch_rows = jnp.tile(pos[1:, :], (B, 1)) + p["patch_b"]
    base = jnp.concatenate([cls_rows, patch_rows], axis=0)          # (BN, D)

    # ARPL head constants.
    pts_s = (1.0 + 2.0 / D) * p["points"]                           # (K, D)
    c2s = jnp.sum(p["points"] ** 2, axis=-1) / float(D)             # (K,)

    # Additive block-diagonal batch mask, pre-tiled for all heads.
    bid = np.concatenate([np.arange(B), np.repeat(np.arange(B), NP)])
    mask1 = np.where(bid[:, None] == bid[None, :], 0.0, NEG_INF).astype(np.float32)
    mask = jnp.asarray(np.tile(mask1, (NH, 1)))                     # (NH*BN, BN)

    slab32 = jnp.zeros((SLAB32_ROWS, D), jnp.float32)
    slab32 = slab32.at[R_PATCHW:R_PATCHW + CPP, :].set(p["patch_w"])
    slab32 = slab32.at[R_W2:R_W2 + MLP, :].set(p["w2"])
    slab32 = slab32.at[R_BASE:R_BASE + BN, :].set(base)
    slab32 = slab32.at[R_LN1G, :].set(p["ln1_g"][0])
    slab32 = slab32.at[R_LN1B, :].set(p["ln1_b"][0])
    slab32 = slab32.at[R_LN2G, :].set(p["ln2_g"][0])
    slab32 = slab32.at[R_LN2B, :].set(p["ln2_b"][0])
    slab32 = slab32.at[R_LNFG, :].set(p["lnf_g"][0])
    slab32 = slab32.at[R_LNFB, :].set(p["lnf_b"][0])
    slab32 = slab32.at[R_BATTN, :].set(battn)
    slab32 = slab32.at[R_B2, :].set(p["b2"][0])
    slab32 = slab32.at[R_PTS:R_PTS + NUM_CLASSES, :].set(pts_s)
    slab32 = slab32.at[R_C2, 0:NUM_CLASSES].set(c2s)
    slab32 = slab32.at[R_MASK:R_MASK + NH * BN, 0:BN].set(mask)

    slabw = jnp.zeros((SLABW_ROWS, SLABW_COLS), jnp.float32)
    slabw = slabw.at[0:D, 0:QKVO_COLS].set(wqkvo)
    slabw = slabw.at[0:D, C_W1:C_W1 + MLP].set(p["w1"])
    slabw = slabw.at[R_BQK, 0:2 * D].set(bqk)
    slabw = slabw.at[R_B1, 0:MLP].set(p["b1"][0])

    return {"slab32": slab32, "slabw": slabw}


# --------------------------------------------------------------------------- #
# Per-call wrapper: im2col of the images (pure data reshape) + one pallas_call.
# --------------------------------------------------------------------------- #
def _extract_patches(imgs):
    # NCHW -> (B*NP, C*P*P): im2col for a stride-P, kernel-P Conv2d.
    x = imgs.reshape(B, C_IN, IMG // P, P, IMG // P, P)
    x = x.transpose(0, 2, 4, 1, 3, 5)
    return x.reshape(B * NP, CPP)


@jax.jit
def vit_arpl_forward(imgs, prep):
    xpat = _extract_patches(imgs)                                   # (B*NP, CPP)
    return pl.pallas_call(
        _fused_vit_arpl_kernel,
        out_shape=jax.ShapeDtypeStruct((B, NUM_CLASSES), jnp.float32),
    )(xpat, prep["slab32"], prep["slabw"])


# --------------------------------------------------------------------------- #
# Pure-JAX reference (standard [cls, patches] per-batch layout) for correctness.
# --------------------------------------------------------------------------- #
def vit_arpl_reference(imgs, p):
    patches = _extract_patches(imgs)
    tok = patches @ p["patch_w"] + p["patch_b"]
    tokens = jnp.concatenate([jnp.broadcast_to(p["cls"], (B, 1, D)),
                              tok.reshape(B, NP, D)], axis=1) + p["pos"]
    x = tokens
    h = _ln(x, p["ln1_g"], p["ln1_b"])
    q = jnp.einsum("bnd,hde->bhne", h, p["wq"]) + p["bq"][None]
    k = jnp.einsum("bnd,hde->bhne", h, p["wk"]) + p["bk"][None]
    v = jnp.einsum("bnd,hde->bhne", h, p["wv"]) + p["bv"][None]
    s = jnp.einsum("bhqe,bhke->bhqk", q, k) / math.sqrt(DH)
    a = jax.nn.softmax(s, axis=-1)
    o = jnp.einsum("bhqk,bhke->bhqe", a, v)
    attn = jnp.einsum("bhqe,hed->bqd", o, p["wo"]) + p["bo"]
    x = x + attn
    h2 = _ln(x, p["ln2_g"], p["ln2_b"])
    m = jax.nn.gelu(h2 @ p["w1"] + p["b1"], approximate=True) @ p["w2"] + p["b2"]
    x = x + m
    feats = _ln(x, p["lnf_g"], p["lnf_b"])[:, 0, :]
    dot = feats @ p["points"].T
    f2 = jnp.sum(feats ** 2, axis=-1, keepdims=True)
    c2 = jnp.sum(p["points"] ** 2, axis=-1, keepdims=True)
    dist_l2 = (f2 - 2.0 * dot + c2.T) / float(D)
    return dist_l2 - dot


# --------------------------------------------------------------------------- #
# Deterministic parameter init (synthetic weights; no checkpoint loading).
# --------------------------------------------------------------------------- #
def init_params(key):
    ks = jax.random.split(key, 10)
    nrm = lambda k, shp, s=0.02: s * jax.random.normal(k, shp, jnp.float32)
    p = {}
    conv_w = nrm(ks[0], (D, C_IN, P, P))                 # torch Conv2d weight layout
    p["patch_w"] = conv_w.reshape(D, CPP).T              # (C*P*P, D)
    p["patch_b"] = jnp.zeros((1, D), jnp.float32)
    p["cls"] = nrm(ks[1], (1, 1, D))
    p["pos"] = nrm(ks[2], (1, N, D))
    p["ln1_g"] = jnp.ones((1, D), jnp.float32)
    p["ln1_b"] = jnp.zeros((1, D), jnp.float32)
    p["wq"] = nrm(ks[3], (NH, D, DH))
    p["wk"] = nrm(ks[4], (NH, D, DH))
    p["wv"] = nrm(ks[5], (NH, D, DH))
    p["bq"] = jnp.zeros((NH, 1, DH), jnp.float32)
    p["bk"] = jnp.zeros((NH, 1, DH), jnp.float32)
    p["bv"] = jnp.zeros((NH, 1, DH), jnp.float32)
    p["wo"] = nrm(ks[6], (NH, DH, D))
    p["bo"] = jnp.zeros((1, D), jnp.float32)
    p["ln2_g"] = jnp.ones((1, D), jnp.float32)
    p["ln2_b"] = jnp.zeros((1, D), jnp.float32)
    p["w1"] = nrm(ks[7], (D, MLP))
    p["b1"] = jnp.zeros((1, MLP), jnp.float32)
    p["w2"] = nrm(ks[8], (MLP, D))
    p["b2"] = jnp.zeros((1, D), jnp.float32)
    p["lnf_g"] = jnp.ones((1, D), jnp.float32)
    p["lnf_b"] = jnp.zeros((1, D), jnp.float32)
    # ARPL Dist(init='random'): 0.1 * randn(num_classes * num_centers, feat_dim)
    p["points"] = 0.1 * jax.random.normal(
        ks[9], (NUM_CLASSES * NUM_CENTERS, D), jnp.float32)
    return p


if __name__ == "__main__":
    key = jax.random.PRNGKey(0)
    k_param, k_img = jax.random.split(key)
    params = init_params(k_param)
    prep = prepare_params(params)          # one-time packed slabs (not per-call)
    imgs = jax.random.normal(k_img, (B, C_IN, IMG, IMG), jnp.float32)

    logits = vit_arpl_forward(imgs, prep)
    logits = jax.block_until_ready(logits)
    assert logits.shape == (B, NUM_CLASSES), logits.shape

    ref = vit_arpl_reference(imgs, params)
    assert jnp.allclose(logits, ref, atol=5e-3, rtol=5e-3), (
        f"max abs diff {jnp.max(jnp.abs(logits - ref))}")
    print("KERNEL_OK")
</pallas_src>

<mosaic_0001>
module attributes {stable_mosaic.version = 11 : i64} {
  func.func @_fused_vit_arpl_kernel(%arg0: memref<8x192xf32, #tpu.memory_space<vmem>>, %arg1: memref<392x32xf32, #tpu.memory_space<vmem>>, %arg2: memref<40x384xf32, #tpu.memory_space<vmem>>, %arg3: memref<2x4xf32, #tpu.memory_space<vmem>>) attributes {dimension_semantics = [], scalar_prefetch = 0 : i64, scratch_operands = 0 : i64, tpu.core_type = #tpu.core_type<tc>} {
    %c0 = arith.constant 0 : index
    %c0_0 = arith.constant 0 : index
    %0 = vector.load %arg1[%c0, %c0_0] : memref<392x32xf32, #tpu.memory_space<vmem>>, vector<192x32xf32>
    %c192 = arith.constant 192 : index
    %c0_1 = arith.constant 0 : index
    %1 = vector.load %arg1[%c192, %c0_1] : memref<392x32xf32, #tpu.memory_space<vmem>>, vector<128x32xf32>
    %c320 = arith.constant 320 : index
    %c0_2 = arith.constant 0 : index
    %2 = vector.load %arg1[%c320, %c0_2] : memref<392x32xf32, #tpu.memory_space<vmem>>, vector<10x32xf32>
    %c336 = arith.constant 336 : index
    %c0_3 = arith.constant 0 : index
    %3 = vector.load %arg1[%c336, %c0_3] : memref<392x32xf32, #tpu.memory_space<vmem>>, vector<1x32xf32>
    %c337 = arith.constant 337 : index
    %c0_4 = arith.constant 0 : index
    %4 = vector.load %arg1[%c337, %c0_4] : memref<392x32xf32, #tpu.memory_space<vmem>>, vector<1x32xf32>
    %c338 = arith.constant 338 : index
    %c0_5 = arith.constant 0 : index
    %5 = vector.load %arg1[%c338, %c0_5] : memref<392x32xf32, #tpu.memory_space<vmem>>, vector<1x32xf32>
    %c339 = arith.constant 339 : index
    %c0_6 = arith.constant 0 : index
    %6 = vector.load %arg1[%c339, %c0_6] : memref<392x32xf32, #tpu.memory_space<vmem>>, vector<1x32xf32>
    %c340 = arith.constant 340 : index
    %c0_7 = arith.constant 0 : index
    %7 = vector.load %arg1[%c340, %c0_7] : memref<392x32xf32, #tpu.memory_space<vmem>>, vector<1x32xf32>
    %c341 = arith.constant 341 : index
    %c0_8 = arith.constant 0 : index
    %8 = vector.load %arg1[%c341, %c0_8] : memref<392x32xf32, #tpu.memory_space<vmem>>, vector<1x32xf32>
    %c342 = arith.constant 342 : index
    %c0_9 = arith.constant 0 : index
    %9 = vector.load %arg1[%c342, %c0_9] : memref<392x32xf32, #tpu.memory_space<vmem>>, vector<1x32xf32>
    %c343 = arith.constant 343 : index
    %c0_10 = arith.constant 0 : index
    %10 = vector.load %arg1[%c343, %c0_10] : memref<392x32xf32, #tpu.memory_space<vmem>>, vector<1x32xf32>
    %c344 = arith.constant 344 : index
    %c0_11 = arith.constant 0 : index
    %11 = vector.load %arg1[%c344, %c0_11] : memref<392x32xf32, #tpu.memory_space<vmem>>, vector<4x32xf32>
    %c348 = arith.constant 348 : index
    %c0_12 = arith.constant 0 : index
    %12 = vector.load %arg1[%c348, %c0_12] : memref<392x32xf32, #tpu.memory_space<vmem>>, vector<1x4xf32>
    %c352 = arith.constant 352 : index
    %c0_13 = arith.constant 0 : index
    %13 = vector.load %arg1[%c352, %c0_13] : memref<392x32xf32, #tpu.memory_space<vmem>>, vector<40x10xf32>
    %c0_14 = arith.constant 0 : index
    %c0_15 = arith.constant 0 : index
    %14 = vector.load %arg2[%c0_14, %c0_15] : memref<40x384xf32, #tpu.memory_space<vmem>>, vector<32x192xf32>
    %c0_16 = arith.constant 0 : index
    %c256 = arith.constant 256 : index
    %15 = vector.load %arg2[%c0_16, %c256] : memref<40x384xf32, #tpu.memory_space<vmem>>, vector<32x128xf32>
    %c32 = arith.constant 32 : index
    %c0_17 = arith.constant 0 : index
    %16 = vector.load %arg2[%c32, %c0_17] : memref<40x384xf32, #tpu.memory_space<vmem>>, vector<1x64xf32>
    %c33 = arith.constant 33 : index
    %c0_18 = arith.constant 0 : index
    %17 = vector.load %arg2[%c33, %c0_18] : memref<40x384xf32, #tpu.memory_space<vmem>>, vector<1x128xf32>
    %c0_19 = arith.constant 0 : index
    %c0_20 = arith.constant 0 : index
    %18 = vector.load %arg0[%c0_19, %c0_20] : memref<8x192xf32, #tpu.memory_space<vmem>>, vector<8x192xf32>
    %cst = arith.constant dense<0.000000e+00> : vector<8x32xf32>
    %19 = tpu.matmul %18, %0, %cst {dimension_numbers = #tpu.dot_dimension_numbers<[1], [0], [0], [1], [0, 0, 1, 1], [], []>} : vector<8x192xf32>, vector<192x32xf32>, vector<8x32xf32> -> vector<8x32xf32>
    %cst_21 = arith.constant 0.000000e+00 : f32
    %20 = vector.broadcast %cst_21 : f32 to vector<2x32xf32>
    %21 = tpu.concatenate %20, %19 in 0 : vector<2x32xf32>, vector<8x32xf32> -> vector<10x32xf32>
    %22 = arith.addf %2, %21 : vector<10x32xf32>
    %cst_22 = arith.constant dense<0.000000e+00> : vector<10xf32>
    %23 = vector.multi_reduction <add>, %22, %cst_22 [1] : vector<10x32xf32> to vector<10xf32>
    %24 = vector.shape_cast %23 : vector<10xf32> to vector<10x1xf32>
    %cst_23 = arith.constant 3.200000e+01 : f32
    %25 = vector.broadcast %cst_23 : f32 to vector<10x1xf32>
    %26 = arith.divf %24, %25 : vector<10x1xf32>
    %27 = vector.broadcast %26 : vector<10x1xf32> to vector<10x32xf32>
    %28 = arith.subf %22, %27 : vector<10x32xf32>
    %29 = arith.mulf %28, %28 : vector<10x32xf32>
    %cst_24 = arith.constant dense<0.000000e+00> : vector<10xf32>
    %30 = vector.multi_reduction <add>, %29, %cst_24 [1] : vector<10x32xf32> to vector<10xf32>
    %31 = vector.shape_cast %30 : vector<10xf32> to vector<10x1xf32>
    %cst_25 = arith.constant 3.200000e+01 : f32
    %32 = vector.broadcast %cst_25 : f32 to vector<10x1xf32>
    %33 = arith.divf %31, %32 : vector<10x1xf32>
    %34 = vector.broadcast %26 : vector<10x1xf32> to vector<10x32xf32>
    %35 = arith.subf %22, %34 : vector<10x32xf32>
    %cst_26 = arith.constant 9.99999997E-7 : f32
    %36 = vector.broadcast %cst_26 : f32 to vector<10x1xf32>
    %37 = arith.addf %33, %36 : vector<10x1xf32>
    %38 = math.rsqrt %37 : vector<10x1xf32>
    %39 = vector.broadcast %38 : vector<10x1xf32> to vector<10x32xf32>
    %40 = arith.mulf %35, %39 : vector<10x32xf32>
    %41 = vector.broadcast %3 : vector<1x32xf32> to vector<10x32xf32>
    %42 = arith.mulf %40, %41 : vector<10x32xf32>
    %43 = vector.broadcast %4 : vector<1x32xf32> to vector<10x32xf32>
    %44 = arith.addf %42, %43 : vector<10x32xf32>
    %cst_27 = arith.constant dense<0.000000e+00> : vector<10x192xf32>
    %45 = tpu.matmul %44, %14, %cst_27 {dimension_numbers = #tpu.dot_dimension_numbers<[1], [0], [0], [1], [0, 0, 1, 1], [], []>} : vector<10x32xf32>, vector<32x192xf32>, vector<10x192xf32> -> vector<10x192xf32>
    %46 = vector.extract_strided_slice %45 {offsets = [0, 0], sizes = [10, 64], strides = [1, 1]} : vector<10x192xf32> to vector<10x64xf32>
    %47 = vector.broadcast %16 : vector<1x64xf32> to vector<10x64xf32>
    %48 = arith.addf %46, %47 : vector<10x64xf32>
    %49 = vector.extract_strided_slice %48 {offsets = [0, 0], sizes = [10, 32], strides = [1, 1]} : vector<10x64xf32> to vector<10x32xf32>
    %50 = vector.extract_strided_slice %48 {offsets = [0, 32], sizes = [10, 32], strides = [1, 1]} : vector<10x64xf32> to vector<10x32xf32>
    %51 = vector.extract_strided_slice %45 {offsets = [0, 64], sizes = [10, 128], strides = [1, 1]} : vector<10x192xf32> to vector<10x128xf32>
    %52 = vector.extract_strided_slice %49 {offsets = [0, 0], sizes = [10, 8], strides = [1, 1]} : vector<10x32xf32> to vector<10x8xf32>
    %53 = vector.extract_strided_slice %50 {offsets = [0, 0], sizes = [10, 8], strides = [1, 1]} : vector<10x32xf32> to vector<10x8xf32>
    "tpu.trace_start"() <{level = 10 : i32, message = "qd,kd->qk"}> : () -> ()
    %cst_28 = arith.constant dense<0.000000e+00> : vector<10x10xf32>
    %54 = tpu.matmul %52, %53, %cst_28 {dimension_numbers = #tpu.dot_dimension_numbers<[1], [1], [0], [0], [0, 0, 1, 0], [], []>} : vector<10x8xf32>, vector<10x8xf32>, vector<10x10xf32> -> vector<10x10xf32>
    "tpu.trace_stop"() : () -> ()
    %55 = vector.extract_strided_slice %49 {offsets = [0, 8], sizes = [10, 8], strides = [1, 1]} : vector<10x32xf32> to vector<10x8xf32>
    %56 = vector.extract_strided_slice %50 {offsets = [0, 8], sizes = [10, 8], strides = [1, 1]} : vector<10x32xf32> to vector<10x8xf32>
    "tpu.trace_start"() <{level = 10 : i32, message = "qd,kd->qk"}> : () -> ()
    %cst_29 = arith.constant dense<0.000000e+00> : vector<10x10xf32>
    %57 = tpu.matmul %55, %56, %cst_29 {dimension_numbers = #tpu.dot_dimension_numbers<[1], [1], [0], [0], [0, 0, 1, 0], [], []>} : vector<10x8xf32>, vector<10x8xf32>, vector<10x10xf32> -> vector<10x10xf32>
    "tpu.trace_stop"() : () -> ()
    %58 = vector.extract_strided_slice %49 {offsets = [0, 16], sizes = [10, 8], strides = [1, 1]} : vector<10x32xf32> to vector<10x8xf32>
    %59 = vector.extract_strided_slice %50 {offsets = [0, 16], sizes = [10, 8], strides = [1, 1]} : vector<10x32xf32> to vector<10x8xf32>
    "tpu.trace_start"() <{level = 10 : i32, message = "qd,kd->qk"}> : () -> ()
    %cst_30 = arith.constant dense<0.000000e+00> : vector<10x10xf32>
    %60 = tpu.matmul %58, %59, %cst_30 {dimension_numbers = #tpu.dot_dimension_numbers<[1], [1], [0], [0], [0, 0, 1, 0], [], []>} : vector<10x8xf32>, vector<10x8xf32>, vector<10x10xf32> -> vector<10x10xf32>
    "tpu.trace_stop"() : () -> ()
    %61 = vector.extract_strided_slice %49 {offsets = [0, 24], sizes = [10, 8], strides = [1, 1]} : vector<10x32xf32> to vector<10x8xf32>
    %62 = vector.extract_strided_slice %50 {offsets = [0, 24], sizes = [10, 8], strides = [1, 1]} : vector<10x32xf32> to vector<10x8xf32>
    "tpu.trace_start"() <{level = 10 : i32, message = "qd,kd->qk"}> : () -> ()
    %cst_31 = arith.constant dense<0.000000e+00> : vector<10x10xf32>
    %63 = tpu.matmul %61, %62, %cst_31 {dimension_numbers = #tpu.dot_dimension_numbers<[1], [1], [0], [0], [0, 0, 1, 0], [], []>} : vector<10x8xf32>, vector<10x8xf32>, vector<10x10xf32> -> vector<10x10xf32>
    "tpu.trace_stop"() : () -> ()
    %64 = tpu.concatenate %54, %57, %60, %63 in 0 : vector<10x10xf32>, vector<10x10xf32>, vector<10x10xf32>, vector<10x10xf32> -> vector<40x10xf32>
    %65 = arith.addf %64, %13 : vector<40x10xf32>
    %cst_32 = arith.constant dense<0xFF800000> : vector<40xf32>
    %66 = vector.multi_reduction <maximumf>, %65, %cst_32 [1] : vector<40x10xf32> to vector<40xf32>
    %67 = vector.shape_cast %66 : vector<40xf32> to vector<40x1xf32>
    %68 = vector.broadcast %67 : vector<40x1xf32> to vector<40x10xf32>
    %69 = arith.subf %65, %68 : vector<40x10xf32>
    %70 = math.exp %69 : vector<40x10xf32>
    %cst_33 = arith.constant dense<0.000000e+00> : vector<40xf32>
    %71 = vector.multi_reduction <add>, %70, %cst_33 [1] : vector<40x10xf32> to vector<40xf32>
    %72 = vector.shape_cast %71 : vector<40xf32> to vector<40x1xf32>
    %73 = tpu.reciprocal %72 {approx = true} : vector<40x1xf32> -> vector<40x1xf32>
    %74 = vector.broadcast %73 : vector<40x1xf32> to vector<40x10xf32>
    %75 = arith.mulf %70, %74 : vector<40x10xf32>
    %cst_34 = arith.constant 0.000000e+00 : f32
    %76 = vector.broadcast %cst_34 : f32 to vector<10x32xf32>
    %77 = vector.extract_strided_slice %75 {offsets = [0, 0], sizes = [10, 10], strides = [1, 1]} : vector<40x10xf32> to vector<10x10xf32>
    %78 = vector.extract_strided_slice %51 {offsets = [0, 0], sizes = [10, 32], strides = [1, 1]} : vector<10x128xf32> to vector<10x32xf32>
    %cst_35 = arith.constant dense<0.000000e+00> : vector<10x32xf32>
    %79 = tpu.matmul %77, %78, %cst_35 {dimension_numbers = #tpu.dot_dimension_numbers<[1], [0], [0], [1], [0, 0, 1, 1], [], []>} : vector<10x10xf32>, vector<10x32xf32>, vector<10x32xf32> -> vector<10x32xf32>
    %80 = arith.addf %76, %79 : vector<10x32xf32>
    %81 = vector.extract_strided_slice %75 {offsets = [10, 0], sizes = [10, 10], strides = [1, 1]} : vector<40x10xf32> to vector<10x10xf32>
    %82 = vector.extract_strided_slice %51 {offsets = [0, 32], sizes = [10, 32], strides = [1, 1]} : vector<10x128xf32> to vector<10x32xf32>
    %cst_36 = arith.constant dense<0.000000e+00> : vector<10x32xf32>
    %83 = tpu.matmul %81, %82, %cst_36 {dimension_numbers = #tpu.dot_dimension_numbers<[1], [0], [0], [1], [0, 0, 1, 1], [], []>} : vector<10x10xf32>, vector<10x32xf32>, vector<10x32xf32> -> vector<10x32xf32>
    %84 = arith.addf %80, %83 : vector<10x32xf32>
    %85 = vector.extract_strided_slice %75 {offsets = [20, 0], sizes = [10, 10], strides = [1, 1]} : vector<40x10xf32> to vector<10x10xf32>
    %86 = vector.extract_strided_slice %51 {offsets = [0, 64], sizes = [10, 32], strides = [1, 1]} : vector<10x128xf32> to vector<10x32xf32>
    %cst_37 = arith.constant dense<0.000000e+00> : vector<10x32xf32>
    %87 = tpu.matmul %85, %86, %cst_37 {dimension_numbers = #tpu.dot_dimension_numbers<[1], [0], [0], [1], [0, 0, 1, 1], [], []>} : vector<10x10xf32>, vector<10x32xf32>, vector<10x32xf32> -> vector<10x32xf32>
    %88 = arith.addf %84, %87 : vector<10x32xf32>
    %89 = vector.extract_strided_slice %75 {offsets = [30, 0], sizes = [10, 10], strides = [1, 1]} : vector<40x10xf32> to vector<10x10xf32>
    %90 = vector.extract_strided_slice %51 {offsets = [0, 96], sizes = [10, 32], strides = [1, 1]} : vector<10x128xf32> to vector<10x32xf32>
    %cst_38 = arith.constant dense<0.000000e+00> : vector<10x32xf32>
    %91 = tpu.matmul %89, %90, %cst_38 {dimension_numbers = #tpu.dot_dimension_numbers<[1], [0], [0], [1], [0, 0, 1, 1], [], []>} : vector<10x10xf32>, vector<10x32xf32>, vector<10x32xf32> -> vector<10x32xf32>
    %92 = arith.addf %88, %91 : vector<10x32xf32>
    %93 = arith.addf %22, %92 : vector<10x32xf32>
    %94 = vector.broadcast %9 : vector<1x32xf32> to vector<10x32xf32>
    %95 = arith.addf %93, %94 : vector<10x32xf32>
    %cst_39 = arith.constant dense<0.000000e+00> : vector<10xf32>
    %96 = vector.multi_reduction <add>, %95, %cst_39 [1] : vector<10x32xf32> to vector<10xf32>
    %97 = vector.shape_cast %96 : vector<10xf32> to vector<10x1xf32>
    %cst_40 = arith.constant 3.200000e+01 : f32
    %98 = vector.broadcast %cst_40 : f32 to vector<10x1xf32>
    %99 = arith.divf %97, %98 : vector<10x1xf32>
    %100 = vector.broadcast %99 : vector<10x1xf32> to vector<10x32xf32>
    %101 = arith.subf %95, %100 : vector<10x32xf32>
    %102 = arith.mulf %101, %101 : vector<10x32xf32>
    %cst_41 = arith.constant dense<0.000000e+00> : vector<10xf32>
    %103 = vector.multi_reduction <add>, %102, %cst_41 [1] : vector<10x32xf32> to vector<10xf32>
    %104 = vector.shape_cast %103 : vector<10xf32> to vector<10x1xf32>
    %cst_42 = arith.constant 3.200000e+01 : f32
    %105 = vector.broadcast %cst_42 : f32 to vector<10x1xf32>
    %106 = arith.divf %104, %105 : vector<10x1xf32>
    %107 = vector.broadcast %99 : vector<10x1xf32> to vector<10x32xf32>
    %108 = arith.subf %95, %107 : vector<10x32xf32>
    %cst_43 = arith.constant 9.99999997E-7 : f32
    %109 = vector.broadcast %cst_43 : f32 to vector<10x1xf32>
    %110 = arith.addf %106, %109 : vector<10x1xf32>
    %111 = math.rsqrt %110 : vector<10x1xf32>
    %112 = vector.broadcast %111 : vector<10x1xf32> to vector<10x32xf32>
    %113 = arith.mulf %108, %112 : vector<10x32xf32>
    %114 = vector.broadcast %5 : vector<1x32xf32> to vector<10x32xf32>
    %115 = arith.mulf %113, %114 : vector<10x32xf32>
    %116 = vector.broadcast %6 : vector<1x32xf32> to vector<10x32xf32>
    %117 = arith.addf %115, %116 : vector<10x32xf32>
    %cst_44 = arith.constant dense<0.000000e+00> : vector<10x128xf32>
    %118 = tpu.matmul %117, %15, %cst_44 {dimension_numbers = #tpu.dot_dimension_numbers<[1], [0], [0], [1], [0, 0, 1, 1], [], []>} : vector<10x32xf32>, vector<32x128xf32>, vector<10x128xf32> -> vector<10x128xf32>
    %119 = vector.broadcast %17 : vector<1x128xf32> to vector<10x128xf32>
    %120 = arith.addf %118, %119 : vector<10x128xf32>
    %121 = arith.mulf %120, %120 : vector<10x128xf32>
    %122 = arith.mulf %120, %121 : vector<10x128xf32>
    %cst_45 = arith.constant 4.471500e-02 : f32
    %123 = vector.broadcast %cst_45 : f32 to vector<10x128xf32>
    %124 = arith.mulf %123, %122 : vector<10x128xf32>
    %125 = arith.addf %120, %124 : vector<10x128xf32>
    %cst_46 = arith.constant 0.797884583 : f32
    %126 = vector.broadcast %cst_46 : f32 to vector<10x128xf32>
    %127 = arith.mulf %126, %125 : vector<10x128xf32>
    %128 = math.tanh %127 : vector<10x128xf32>
    %cst_47 = arith.constant 1.000000e+00 : f32
    %129 = vector.broadcast %cst_47 : f32 to vector<10x128xf32>
    %130 = arith.addf %129, %128 : vector<10x128xf32>
    %cst_48 = arith.constant 5.000000e-01 : f32
    %131 = vector.broadcast %cst_48 : f32 to vector<10x128xf32>
    %132 = arith.mulf %131, %130 : vector<10x128xf32>
    %133 = arith.mulf %120, %132 : vector<10x128xf32>
    %cst_49 = arith.constant dense<0.000000e+00> : vector<10x32xf32>
    %134 = tpu.matmul %133, %1, %cst_49 {dimension_numbers = #tpu.dot_dimension_numbers<[1], [0], [0], [1], [0, 0, 1, 1], [], []>} : vector<10x128xf32>, vector<128x32xf32>, vector<10x32xf32> -> vector<10x32xf32>
    %135 = vector.broadcast %10 : vector<1x32xf32> to vector<10x32xf32>
    %136 = arith.addf %134, %135 : vector<10x32xf32>
    %137 = arith.addf %95, %136 : vector<10x32xf32>
    %138 = vector.extract_strided_slice %137 {offsets = [0, 0], sizes = [2, 32], strides = [1, 1]} : vector<10x32xf32> to vector<2x32xf32>
    %cst_50 = arith.constant dense<0.000000e+00> : vector<2xf32>
    %139 = vector.multi_reduction <add>, %138, %cst_50 [1] : vector<2x32xf32> to vector<2xf32>
    %140 = vector.shape_cast %139 : vector<2xf32> to vector<2x1xf32>
    %cst_51 = arith.constant 3.200000e+01 : f32
    %141 = vector.broadcast %cst_51 : f32 to vector<2x1xf32>
    %142 = arith.divf %140, %141 : vector<2x1xf32>
    %143 = vector.broadcast %142 : vector<2x1xf32> to vector<2x32xf32>
    %144 = arith.subf %138, %143 : vector<2x32xf32>
    %145 = arith.mulf %144, %144 : vector<2x32xf32>
    %cst_52 = arith.constant dense<0.000000e+00> : vector<2xf32>
    %146 = vector.multi_reduction <add>, %145, %cst_52 [1] : vector<2x32xf32> to vector<2xf32>
    %147 = vector.shape_cast %146 : vector<2xf32> to vector<2x1xf32>
    %cst_53 = arith.constant 3.200000e+01 : f32
    %148 = vector.broadcast %cst_53 : f32 to vector<2x1xf32>
    %149 = arith.divf %147, %148 : vector<2x1xf32>
    %150 = vector.broadcast %142 : vector<2x1xf32> to vector<2x32xf32>
    %151 = arith.subf %138, %150 : vector<2x32xf32>
    %cst_54 = arith.constant 9.99999997E-7 : f32
    %152 = vector.broadcast %cst_54 : f32 to vector<2x1xf32>
    %153 = arith.addf %149, %152 : vector<2x1xf32>
    %154 = math.rsqrt %153 : vector<2x1xf32>
    %155 = vector.broadcast %154 : vector<2x1xf32> to vector<2x32xf32>
    %156 = arith.mulf %151, %155 : vector<2x32xf32>
    %157 = vector.broadcast %7 : vector<1x32xf32> to vector<2x32xf32>
    %158 = arith.mulf %156, %157 : vector<2x32xf32>
    %159 = vector.broadcast %8 : vector<1x32xf32> to vector<2x32xf32>
    %160 = arith.addf %158, %159 : vector<2x32xf32>
    "tpu.trace_start"() <{level = 10 : i32, message = "bd,kd->bk"}> : () -> ()
    %cst_55 = arith.constant dense<0.000000e+00> : vector<2x4xf32>
    %161 = tpu.matmul %160, %11, %cst_55 {dimension_numbers = #tpu.dot_dimension_numbers<[1], [1], [0], [0], [0, 0, 1, 0], [], []>} : vector<2x32xf32>, vector<4x32xf32>, vector<2x4xf32> -> vector<2x4xf32>
    "tpu.trace_stop"() : () -> ()
    %162 = arith.mulf %160, %160 : vector<2x32xf32>
    %cst_56 = arith.constant dense<0.000000e+00> : vector<2xf32>
    %163 = vector.multi_reduction <add>, %162, %cst_56 [1] : vector<2x32xf32> to vector<2xf32>
    %164 = vector.shape_cast %163 : vector<2xf32> to vector<2x1xf32>
    %cst_57 = arith.constant 3.125000e-02 : f32
    %165 = vector.broadcast %cst_57 : f32 to vector<2x1xf32>
    %166 = arith.mulf %164, %165 : vector<2x1xf32>
    %167 = vector.broadcast %166 : vector<2x1xf32> to vector<2x4xf32>
    %168 = vector.broadcast %12 : vector<1x4xf32> to vector<2x4xf32>
    %169 = arith.addf %167, %168 : vector<2x4xf32>
    %170 = arith.subf %169, %161 : vector<2x4xf32>
    %c0_58 = arith.constant 0 : index
    %c0_59 = arith.constant 0 : index
    %171 = vector.load %arg3[%c0_58, %c0_59] : memref<2x4xf32, #tpu.memory_space<vmem>>, vector<2x4xf32>
    tpu.vector_store %arg3[%c0_58, %c0_59], %170 {strides = array<i32>} : memref<2x4xf32, #tpu.memory_space<vmem>>, vector<2x4xf32>,
    return
  }
}

</mosaic_0001>

<bundles_post_ra>
// kernel: vit_arpl_forward.1
= control target key start
LH: loop header
LB: loop body
LE: loop exit
PB: predicated region body
PF: predicated region fallthrough
CT: control target
= control target key end

     0   :  { %v1910_v3 = vmov 0.0|0.0   ;;  %vm88_vm0 = vcmask 523264   ;;  %s2311_s0 = inlined_call_operand.vmem [shape: f32[8,192], index: 0, kind: input, shape index: {}]   ;;  %s2312_s1 = inlined_call_operand.vmem [shape: f32[392,32], index: 1, kind: input, shape index: {}]   ;;  %s2313_s2 = inlined_call_operand.vmem [shape: f32[40,384], index: 2, kind: input, shape index: {}]   ;;  %s2314_s3 = inlined_call_operand.hbm [shape: f32[2,4], index: 3, kind: output, shape index: {}]  }
   0x1   :  { %v15_v0 = vld [vmem:[%s2312_s1] sm:$0xff]  ;;  %v16_v1 = vld [vmem:[%s2312_s1 + $0x8] sm:$0xff]  ;;  %v17_v2 = vld [vmem:[%s2312_s1 + $0x10] sm:$0xff]  ;;  %1665 = vmatprep.subr.bf16.mxu0 %v1910_v3 }
   0x2   :  { %v1666_v4 = vpack.c.bf16 %v16_v1, %v15_v0  ;;  %v18_v5 = vld [vmem:[%s2312_s1 + $0x18] sm:$0xff]  ;;  %v19_v7 = vld [vmem:[%s2312_s1 + $0x20] sm:$0xff]  ;;  %v20_v8 = vld [vmem:[%s2312_s1 + $0x28] sm:$0xff] }
   0x3   :  { %v1669_v6 = vpack.c.bf16 %v18_v5, %v17_v2  ;;  %v1672_v9 = vpack.c.bf16 %v20_v8, %v19_v7  ;;  %v21_v10 = vld [vmem:[%s2312_s1 + $0x30] sm:$0xff]  ;;  %v22_v11 = vld [vmem:[%s2312_s1 + $0x38] sm:$0xff]  ;;  %v87_v12 = vld [vmem:[%s2311_s0 + $0x8] sm:$0xff] }
   0x4   :  { %1667 = vmatpush1.bf16.msra.mxu0 %v1666_v4  ;;  %1456 = vmatprep.mubr.msk.f32.mxu0 %vm88_vm0, %v87_v12 }
   0x5   :  { %1668 = vmatprep.subr.bf16.mxu0 %v1910_v3 }
   0x8   :  { %1670 = vmatpush1.bf16.msra.mxu0 %v1669_v6 }
   0x9   :  { %1671 = vmatprep.subr.bf16.mxu0 %v1910_v3 }
   0xa   :  { %8 = vsyncpa [#allocation3], 0  ;;  %v1675_v13 = vpack.c.bf16 %v22_v11, %v21_v10  ;;  %v23_v14 = vld [vmem:[%s2312_s1 + $0x40] sm:$0xff]  ;;  %v24_v15 = vld [vmem:[%s2312_s1 + $0x48] sm:$0xff]  ;;  %vm165_vm1 = vcmask 1041408   ;;  %vm169_vm2 = vcmask 261120  }
   0xb   :  { %v1678_v16 = vpack.c.bf16 %v24_v15, %v23_v14  ;;  %v25_v17 = vld [vmem:[%s2312_s1 + $0x50] sm:$0xff]  ;;  %v26_v18 = vld [vmem:[%s2312_s1 + $0x58] sm:$0xff]  ;;  %v27_v20 = vld [vmem:[%s2312_s1 + $0x60] sm:$0xff]  ;;  %vm173_vm3 = vcmask 254976   ;;  %v1911_v2 = vmov 0.0   ;;  %vm301_vm4 = vcmask 64512  }
   0xc   :  { %1673 = vmatpush1.bf16.msra.mxu0 %v1672_v9  ;;  %v1681_v19 = vpack.c.bf16 %v26_v18, %v25_v17  ;;  %v28_v21 = vld [vmem:[%s2312_s1 + $0x68] sm:$0xff]  ;;  %v29_v23 = vld [vmem:[%s2312_s1 + $0x70] sm:$0xff]  ;;  %v30_v24 = vld [vmem:[%s2312_s1 + $0x78] sm:$0xff]  ;;  %280 = vmatprep.mubr.f32.mxu1 %v1911_v2  ;;  %s1912_s8 = smov 88   ;;  %s1913_s9 = smov 96   ;;  %vm689_vm6 = vcmask 80896  }
   0xd   :  { %1674 = vmatprep.subr.bf16.mxu0 %v1910_v3  ;;  %v1684_v22 = vpack.c.bf16 %v28_v21, %v27_v20  ;;  %v1687_v25 = vpack.c.bf16 %v30_v24, %v29_v23  ;;  %v31_v26 = vld [vmem:[%s2312_s1 + $0x80] sm:$0xff]  ;;  %v32_v27 = vld [vmem:[%s2312_s1 + $0x88] sm:$0xff]  ;;  %v33_v29 = vld [vmem:[%s2312_s1 + $0x90] sm:$0xff]  ;;  %s1914_s10 = smov 80   ;;  %s1915_s11 = smov 120   ;;  %vm667_vm7 = vcmask 1043456  }
   0xe   :  { %v1690_v28 = vpack.c.bf16 %v32_v27, %v31_v26  ;;  %v34_v30 = vld [vmem:[%s2312_s1 + $0x98] sm:$0xff]  ;;  %v35_v32 = vld [vmem:[%s2312_s1 + $0xa0] sm:$0xff]  ;;  %v36_v33 = vld [vmem:[%s2312_s1 + $0xa8] sm:$0xff]  ;;  %s1916_s12 = smov 112   ;;  %s1917_s13 = smov 104   ;;  %vm675_vm8 = vcmask 1045504  }
   0xf   :  { %v1693_v31 = vpack.c.bf16 %v34_v30, %v33_v29  ;;  %v1696_v34 = vpack.c.bf16 %v36_v33, %v35_v32  ;;  %v37_v35 = vld [vmem:[%s2312_s1 + $0xb0] sm:$0xff]  ;;  %v38_v36 = vld [vmem:[%s2312_s1 + $0xb8] sm:$0xff]  ;;  %v86_v38 = vld [vmem:[%s2311_s0] sm:$0xff]  ;;  %s1918_s0 = smov 72   ;;  %s1919_s24 = smov 64   ;;  %vm1921_vm9 = vmmov 1  }
  0x10   :  { %1676 = vmatpush1.bf16.msra.mxu0 %v1675_v13  ;;  %v1699_v37 = vpack.c.bf16 %v38_v36, %v37_v35  ;;  %v55_v40 = vld [vmem:[%s2312_s1 + $0x140] sm:$0xff]  ;;  %v56_v43 = vld [vmem:[%s2312_s1 + $0x148] sm:$0x3]  ;;  %v74_v63 = vld [vmem:[%s2313_s2 + $0x18] sm:$0xff]  ;;  %s1920_s25 = smov 32   ;;  %vm1922_vm11 = vmmov 0  }
  0x11   :  { %1677 = vmatprep.subr.bf16.mxu0 %v1910_v3  ;;  %v73_v59 = vld [vmem:[%s2313_s2 + $0x8] sm:$0xff]  ;;  %v75_v60 = vld [vmem:[%s2313_s2 + $0x20] sm:$0xff]  ;;  %v77_v0 = vld [vmem:[%s2313_s2 + $0x38] sm:$0xff]  ;;  %s1923_s27 = smov [#allocation2]   ;;  %vm1440_vm12 = vcmask 25600  }
  0x12   :  { %v72_v61 = vld [vmem:[%s2313_s2] sm:$0xff]  ;;  %v1701_v62 = vpack.c.bf16 %v75_v60, %v73_v59  ;;  %v79_v1 = vld [vmem:[%s2313_s2 + $0x50] sm:$0xff]  ;;  %v78_v6 = vld [vmem:[%s2313_s2 + $0x48] sm:$0xff]  ;;  %s1448_s28 = sshll.u32 %s1923_s27, 4  ;;  %s1449_s28 = int_to_ptr.vmem [resolvable:$true] %s1448_s28 }
  0x13   :  { %v1705_v4 = vpack.c.bf16 %v79_v1, %v77_v0  ;;  %v76_v5 = vld [vmem:[%s2313_s2 + $0x30] sm:$0xff]  ;;  %v84_v24 = vld [vmem:[%s2313_s2 + $0x60] ss:$0 sm:$0xff]  ;;  %vm2094_vm5 = vmpackc.low %vm301_vm4, %vm301_vm4  ;;  %s1886_s29 = scalar_lea.vmem %s1449_s28, 32  ;;  %p1891_p1 = scmp.lt.s32.totalorder %s1449_s28, %s1449_s28 }
  0x14   :  { %1679 = vmatpush1.bf16.msra.mxu0 %v1678_v16  ;;  %1702 = vmatprep.subr.bf16.mxu1 %v1701_v62  ;;  %v1707_v7 = vpack.c.bf16 %v78_v6, %v76_v5  ;;  %v1457_v15 = vld [vmem:[%s2312_s1 + $0x150] ss:$0 sm:$0xff]  ;;  %v1458_v17 = vld [vmem:[%s2312_s1 + $0x151] ss:$0 sm:$0xff]  ;;  %vm2159_vm10 = vmpackc.low %vm165_vm1, %vm1921_vm9  ;;  %p1887_p0 = scmp.ne.s32.totalorder %s1449_s28, %s1886_s29  ;;  %p1892_p2 = scmp.lt.s32.totalorder %s1886_s29, %s1886_s29 }
  0x15   :  { %1680 = vmatprep.subr.bf16.mxu0 %v1910_v3 }
  0x16   :  { %p1893_p3 = por %p1892_p2, %p1891_p1 }
  0x18   :  { %1682 = vmatpush1.bf16.msra.mxu0 %v1681_v19  ;;  %p1894_p4 = pnand %p1893_p3, %p1887_p0 }
  0x19   :  { %1683 = vmatprep.subr.bf16.mxu0 %v1910_v3 }
  0x1c   :  { %1685 = vmatpush1.bf16.msra.mxu0 %v1684_v22 }
  0x1d   :  { %1686 = vmatprep.subr.bf16.mxu0 %v1910_v3 }
  0x20   :  { %1688 = vmatpush1.bf16.msra.mxu0 %v1687_v25 }
  0x21   :  { %1689 = vmatprep.subr.bf16.mxu0 %v1910_v3 }
  0x24   :  { %1691 = vmatpush1.bf16.msra.mxu0 %v1690_v28 }
  0x25   :  { %1692 = vmatprep.subr.bf16.mxu0 %v1910_v3 }
  0x28   :  { %1694 = vmatpush1.bf16.msra.mxu0 %v1693_v31 }
  0x29   :  { %1695 = vmatprep.subr.bf16.mxu0 %v1910_v3 }
  0x2c   :  { %1697 = vmatpush1.bf16.msra.mxu0 %v1696_v34 }
  0x2d   :  { %1698 = vmatprep.subr.bf16.mxu0 %v1910_v3  ;;  %v1703_v3 = vpack.c.bf16 %v74_v63, %v72_v61 }
  0x2f   :  { %1704 = vmatpush1.bf16.msra.mxu1 %v1703_v3  ;;  %v68_v3 = vld [vmem:[%s2312_s1 + $0x168] sm:$0xff] }
  0x30   :  { %1700 = vmatpush1.bf16.msra.mxu0 %v1699_v37  ;;  %1706 = vmatprep.subr.bf16.mxu1 %v1705_v4  ;;  %v67_v4 = vld [vmem:[%s2312_s1 + $0x160] sm:$0xff] }
  0x33   :  { %157 = vmatmul.mubr.f32.vlgmr.msra.gmra.mrb[0].mxu0 %v86_v38  ;;  %1708 = vmatpush1.bf16.msra.mxu1 %v1707_v7 }
 0x106   :  { %v158_v39 = vpop.f32.mrb[0].mxu0 }
 0x107   :  { %v163_v41 = vrot.slane %v158_v39, 6  ;;  %v160_v42 = vpop.f32.mrb[1].mxu0 }
 0x109   :  { %v166_v44 = vsel %vm165_vm1, 0.0, %v163_v41  ;;  %v2031_v46 = vadd.f32 %v163_v41, %v56_v43 }
 0x10a   :  { %v2029_v45 = vadd.f32 %v166_v44, %v55_v40 }
 0x10b   :  { %v174_v48 = vsel %vm173_vm3, %v2031_v46, 0.0 }
 0x10c   :  { %v170_v47 = vsel %vm169_vm2, %v2029_v45, 0.0 }
 0x10d   :  { %171 = vadd.xlane.f32.xlu0 %v170_v47 }
 0x111   :  { %175 = vadd.xlane.f32.xlu0 %v174_v48 }
 0x19a   :  { %v172_v49 = vpop.xlane.xlu0 %171 }
 0x19b   :  { %v178_v50 = vmul.f32 0.03125, %v172_v49 }
 0x19d   :  { %v180_v51 = vsub.f32 %v2029_v45, %v178_v50 }
 0x19e   :  { %v176_v52 = vpop.xlane.xlu0 %175 }
 0x19f   :  { %v179_v53 = vmul.f32 0.03125, %v176_v52  ;;  %v182_v54 = vmul.f32 %v180_v51, %v180_v51 }
 0x1a1   :  { %v181_v55 = vsub.f32 %v2031_v46, %v179_v53  ;;  %v184_v56 = vsel %vm169_vm2, %v182_v54, 0.0 }
 0x1a2   :  { %185 = vadd.xlane.f32.xlu1 %v184_v56 }
 0x1a3   :  { %v183_v57 = vmul.f32 %v181_v55, %v181_v55 }
 0x1a5   :  { %v187_v58 = vsel %vm173_vm3, %v183_v57, 0.0 }
 0x1a6   :  { %188 = vadd.xlane.f32.xlu1 %v187_v58 }
 0x22f   :  { %v186_v8 = vpop.xlane.xlu1 %185 }
 0x230   :  { %v190_v9 = vmul.f32 0.03125, %v186_v8 }
 0x232   :  { %v192_v10 = vadd.f32 1e-06, %v190_v9 }
 0x233   :  { %v189_v11 = vpop.xlane.xlu1 %188 }
 0x234   :  { %1852 = vrsqrt.f32 %v192_v10  ;;  %v191_v12 = vmul.f32 0.03125, %v189_v11 }
 0x236   :  { %v193_v13 = vadd.f32 1e-06, %v191_v12 }
 0x238   :  { %1854 = vrsqrt.f32 %v193_v13 }
 0x23e   :  { %v1853_v14 = vpop.eup %1852 }
 0x23f   :  { %v196_v16 = vmul.f32 %v1853_v14, %v180_v51  ;;  %v69_v14 = vld [vmem:[%s2312_s1 + $0x170] sm:$0xff] }
 0x241   :  { %v202_v18 = vmul.f32 %v1457_v15, %v196_v16 }
 0x242   :  { %v1855_v19 = vpop.eup %1854 }
 0x243   :  { %v208_v20 = vadd.f32 %v1458_v17, %v202_v18  ;;  %v197_v21 = vmul.f32 %v1855_v19, %v181_v55 }
 0x245   :  { %1459 = vmatmul.mubr.msk.f32.vlgmr.msra.gmra.mrb[0].mxu1 %vm169_vm2, %v208_v20  ;;  %v203_v22 = vmul.f32 %v1457_v15, %v197_v21 }
 0x246   :  { %286 = vmatprep.mubr.f32.mxu1 %v1911_v2 }
 0x247   :  { %v209_v23 = vadd.f32 %v1458_v17, %v203_v22 }
 0x249   :  { %1460 = vmatmul.mubr.msk.f32.gmra.mrb[2].mxu1 %vm169_vm2, %v209_v23 }
 0x318   :  { %v282_v25 = vpop.f32.mrb[0].mxu1 }
 0x319   :  { %v293_v26 = vadd.f32 %v282_v25, %v84_v24  ;;  %v2078_v27 = vpop.f32.mrb[1].mxu1 }
 0x31b   :  { %1562 = vmatprep.mubr.msk.f32.mxu1 %vm301_vm4, %v293_v26 }
 0x31c   :  { %v288_v28 = vpop.f32.mrb[2].mxu1 }
 0x31d   :  { %v2081_v29 = vpack.i.bf16 %v288_v28, %v282_v25  ;;  %v294_v30 = vadd.f32 %v288_v28, %v84_v24  ;;  %v2083_v31 = vpop.f32.mrb[3].mxu1  ;;  %v70_v24 = vld [vmem:[%s2312_s1 + $0x178] sm:$0xff] }
 0x31e   :  { %v1847_v32 = vpack.i.bf16 %v2083_v31, %v2078_v27  ;;  %v2089_v33 = vpack.c.bf16 %v2083_v31, %v2078_v27 }
 0x31f   :  { %v1822_v34 = vpack.i.bf16 %v294_v30, %v293_v26 }
 0x321   :  { %1823 = vrot.lane.b32.xlu1 %v1822_v34, %s1912_s8  ;;  %1818 = vrot.lane.b32.xlu0 %v1822_v34, %s1913_s9 }
 0x325   :  { %1828 = vrot.lane.b32.xlu1 %v1822_v34, %s1914_s10  ;;  %387 = vrot.lane.b32.xlu0 %v294_v30, %s1915_s11 }
 0x329   :  { %385 = vrot.lane.b32.xlu1 %v293_v26, %s1915_s11  ;;  %478 = vrot.lane.b32.xlu0 %v294_v30, %s1916_s12 }
 0x32d   :  { %476 = vrot.lane.b32.xlu1 %v293_v26, %s1916_s12  ;;  %567 = vrot.lane.b32.xlu0 %v293_v26, %s1917_s13  ;;  %v71_v26 = vld [vmem:[%s2312_s1 + $0x180] sm:$0xff] }
 0x331   :  { %1833 = vrot.lane.b32.xlu1 %v1822_v34, %s1918_s0 }
 0x335   :  { %569 = vrot.lane.b32.xlu1 %v294_v30, %s1917_s13 }
 0x393   :  { %v1824_v35 = vpop.permute.xlu1 %1823  ;;  %v1819_v36 = vpop.permute.xlu0 %1818 }
 0x394   :  { %v1826_v37 = vunpack.i.h.bf16 %v1824_v35  ;;  %v1825_v38 = vunpack.i.l.bf16 %v1824_v35  ;;  %v1821_v39 = vunpack.i.h.bf16 %v1819_v36  ;;  %v1820_v40 = vunpack.i.l.bf16 %v1819_v36 }
 0x396   :  { %v1709_v42 = vpack.c.bf16 %v1821_v39, %v1820_v40  ;;  %v1715_v44 = vpack.c.bf16 %v1826_v37, %v1825_v38 }
 0x397   :  { %v1829_v43 = vpop.permute.xlu1 %1828  ;;  %v388_v53 = vpop.permute.xlu0 %387 }
 0x398   :  { %1711 = vmatprep.subr.msk.bf16.mxu1 %vm2094_vm5, %v1709_v42  ;;  %v1831_v48 = vunpack.i.h.bf16 %v1829_v43  ;;  %v1830_v49 = vunpack.i.l.bf16 %v1829_v43 }
 0x399   :  { %1714 = vmatpush3.bf16.xpose.msk.msra.mxu1 %vm2094_vm5, %v1709_v42 }
 0x39a   :  { %1717 = vmatprep.subr.msk.bf16.mxu1 %vm2094_vm5, %v1715_v44  ;;  %v1721_v51 = vpack.c.bf16 %v1831_v48, %v1830_v49 }
 0x39b   :  { %v386_v47 = vpop.permute.xlu1 %385  ;;  %v479_v57 = vpop.permute.xlu0 %478 }
 0x39f   :  { %v477_v50 = vpop.permute.xlu1 %476  ;;  %v568_v58 = vpop.permute.xlu0 %567 }
 0x3a0   :  { %1563 = vmatmul.mubr.msk.f32.vlgmr.msra.gmra.mrb[4].mxu1 %vm301_vm4, %v294_v30 }
 0x3a1   :  { %1720 = vmatpush3.bf16.xpose.msk.msra.mxu1 %vm2094_vm5, %v1715_v44  ;;  %1569 = vmatprep.mubr.msk.f32.mxu1 %vm301_vm4, %v386_v47 }
 0x3a2   :  { %1723 = vmatprep.subr.msk.bf16.mxu1 %vm2094_vm5, %v1721_v51 }
 0x3a3   :  { %v1834_v52 = vpop.permute.xlu1 %1833 }
 0x3a4   :  { %v1836_v54 = vunpack.i.h.bf16 %v1834_v52  ;;  %v1835_v55 = vunpack.i.l.bf16 %v1834_v52 }
 0x3a6   :  { %v1727_v56 = vpack.c.bf16 %v1836_v54, %v1835_v55 }
 0x3a7   :  { %v570_v59 = vpop.permute.xlu1 %569 }
 0x3a8   :  { %1570 = vmatmul.mubr.msk.f32.vlgmr.msra.gmra.mrb[6].mxu1 %vm301_vm4, %v388_v53 }
 0x3a9   :  { %1726 = vmatpush3.bf16.xpose.msk.msra.mxu1 %vm2094_vm5, %v1721_v51  ;;  %1576 = vmatprep.mubr.msk.f32.mxu1 %vm301_vm4, %v477_v50 }
 0x3aa   :  { %1729 = vmatprep.subr.msk.bf16.mxu1 %vm2094_vm5, %v1727_v56 }
 0x3b0   :  { %1577 = vmatmul.mubr.msk.f32.vlgmr.msra.gmra.mrb[8].mxu1 %vm301_vm4, %v479_v57 }
 0x3b1   :  { %1732 = vmatpush3.bf16.xpose.msk.msra.mxu1 %vm2094_vm5, %v1727_v56  ;;  %1583 = vmatprep.mubr.msk.f32.mxu1 %vm301_vm4, %v568_v58 }
 0x3b8   :  { %1584 = vmatmul.mubr.msk.f32.vlgmr.msra.gmra.mrb[10].mxu1 %vm301_vm4, %v570_v59 }
 0x473   :  { %v1564_v60 = vpop.f32.mrb[4].mxu1 }
 0x474   :  { %v376_v61 = vpop.f32.mrb[5].mxu1 }
 0x475   :  { %v684_v8 = vadd.f32 %v376_v61, %v67_v4 }
 0x477   :  { %v690_v15 = vsel %vm689_vm6, %v684_v8, -inf }
 0x47b   :  { %v1571_v62 = vpop.f32.mrb[6].mxu1 }
 0x47c   :  { %v661_v63 = vrot.slane %v1571_v62, 6  ;;  %v467_v0 = vpop.f32.mrb[7].mxu1 }
 0x47d   :  { %v660_v1 = vrot.slane %v467_v0, 6 }
 0x47f   :  { %v662_v5 = vsel %vm165_vm1, %v660_v1, %v661_v63  ;;  %v681_v6 = vsel %vm165_vm1, %v1564_v60, %v660_v1 }
 0x480   :  { %v685_v7 = vadd.f32 %v681_v6, %v68_v3 }
 0x482   :  { %v693_v9 = vsel %vm689_vm6, %v685_v7, -inf }
 0x483   :  { %694 = vmax.xlane.f32.xlu0 %v693_v9  ;;  %v1578_v10 = vpop.f32.mrb[8].mxu1 }
 0x484   :  { %v669_v11 = vrot.slane %v1578_v10, 4  ;;  %v558_v12 = vpop.f32.mrb[9].mxu1 }
 0x485   :  { %v668_v13 = vrot.slane %v558_v12, 4 }
 0x487   :  { %v670_v16 = vsel %vm667_vm7, %v668_v13, %v669_v11  ;;  %691 = vmax.xlane.f32.xlu0 %v690_v15  ;;  %v682_v17 = vsel %vm667_vm7, %v662_v5, %v668_v13 }
 0x488   :  { %v686_v18 = vadd.f32 %v682_v17, %v69_v14 }
 0x48a   :  { %v696_v19 = vsel %vm689_vm6, %v686_v18, -inf }
 0x48b   :  { %697 = vmax.xlane.f32.xlu1 %v696_v19  ;;  %v1585_v20 = vpop.f32.mrb[10].mxu1 }
 0x48c   :  { %v677_v21 = vrot.slane %v1585_v20, 2  ;;  %v649_v22 = vpop.f32.mrb[11].mxu1 }
 0x48d   :  { %v676_v23 = vrot.slane %v649_v22, 2 }
 0x48f   :  { %v683_v25 = vsel %vm675_vm8, %v670_v16, %v676_v23  ;;  %v678_v28 = vsel %vm675_vm8, %v676_v23, %v677_v21 }
 0x490   :  { %v687_v30 = vadd.f32 %v683_v25, %v70_v24  ;;  %v688_v35 = vadd.f32 %v678_v28, %v71_v26 }
 0x492   :  { %v699_v34 = vsel %vm689_vm6, %v687_v30, -inf  ;;  %v702_v36 = vsel %vm689_vm6, %v688_v35, -inf }
 0x493   :  { %700 = vmax.xlane.f32.xlu0 %v699_v34 }
 0x497   :  { %703 = vmax.xlane.f32.xlu0 %v702_v36 }
 0x510   :  { %v695_v37 = vpop.xlane.xlu0 %694 }
 0x511   :  { %v706_v38 = vsub.f32 %v685_v7, %v695_v37 }
 0x513   :  { %v712_v41 = vmul.f32 1.442695, %v706_v38 }
 0x514   :  { %v692_v39 = vpop.xlane.xlu0 %691 }
 0x515   :  { %v705_v40 = vsub.f32 %v684_v8, %v692_v39  ;;  %v1489_v39 = vld [vmem:[%s2312_s1 + $0x156] ss:$0 sm:$0xff] }
 0x517   :  { %v710_v42 = vmul.f32 1.442695, %v705_v40 }
 0x518   :  { %v698_v43 = vpop.xlane.xlu1 %697 }
 0x519   :  { %1856 = vpow2.f32 %v710_v42  ;;  %v707_v44 = vsub.f32 %v686_v18, %v698_v43 }
 0x51a   :  { %1858 = vpow2.f32 %v712_v41 }
 0x51b   :  { %v714_v47 = vmul.f32 1.442695, %v707_v44 }
 0x51d   :  { %1860 = vpow2.f32 %v714_v47 }
 0x520   :  { %v701_v48 = vpop.xlane.xlu0 %700 }
 0x521   :  { %v708_v49 = vsub.f32 %v687_v30, %v701_v48 }
 0x523   :  { %v1857_v50 = vpop.eup %1856  ;;  %v716_v51 = vmul.f32 1.442695, %v708_v49 }
 0x524   :  { %v720_v52 = vsel %vm689_vm6, %v1857_v50, 0.0  ;;  %v1859_v53 = vpop.eup %1858  ;;  %v704_v59 = vpop.xlane.xlu0 %703 }
 0x525   :  { %1862 = vpow2.f32 %v716_v51  ;;  %721 = vadd.xlane.f32.xlu1 %v720_v52  ;;  %v723_v55 = vsel %vm689_vm6, %v1859_v53, 0.0  ;;  %v709_v60 = vsub.f32 %v688_v35, %v704_v59 }
 0x527   :  { %v1861_v54 = vpop.eup %1860  ;;  %v718_v61 = vmul.f32 1.442695, %v709_v60  ;;  %v82_v60 = vld [vmem:[%s2313_s2 + $0x40] sm:$0xff] }
 0x528   :  { %v726_v56 = vsel %vm689_vm6, %v1861_v54, 0.0 }
 0x529   :  { %724 = vadd.xlane.f32.xlu1 %v723_v55  ;;  %727 = vadd.xlane.f32.xlu0 %v726_v56  ;;  %1864 = vpow2.f32 %v718_v61  ;;  %v83_v61 = vld [vmem:[%s2313_s2 + $0x58] sm:$0xff] }
 0x52f   :  { %v1863_v57 = vpop.eup %1862 }
 0x530   :  { %v729_v58 = vsel %vm689_vm6, %v1863_v57, 0.0 }
 0x531   :  { %730 = vadd.xlane.f32.xlu0 %v729_v58  ;;  %v81_v58 = vld [vmem:[%s2313_s2 + $0x28] sm:$0xff] }
 0x533   :  { %v1865_v62 = vpop.eup %1864 }
 0x534   :  { %v732_v63 = vsel %vm689_vm6, %v1865_v62, 0.0 }
 0x53a   :  { %1843 = vrot.lane.b32.xlu1 %v2081_v29, %s1919_s24 }
 0x547   :  { %1838 = vrot.lane.b32.xlu0 %v2081_v29, %s1920_s25 }
 0x55e   :  { %733 = vadd.xlane.f32.xlu1 %v732_v63 }
 0x56f   :  { %1848 = vrot.lane.b32.xlu1 %v1847_v32, %s1913_s9 }
 0x5b2   :  { %v722_v0 = vpop.xlane.xlu1 %721 }
 0x5b6   :  { %v725_v1 = vpop.xlane.xlu1 %724  ;;  %v728_v3 = vpop.xlane.xlu0 %727 }
 0x5b7   :  { %1866 = vrcp.f32 %v725_v1 }
 0x5b8   :  { %1868 = vrcp.f32 %v728_v3 }
 0x5b9   :  { %1870 = vrcp.f32 %v722_v0 }
 0x5ba   :  { %v1844_v29 = vpop.permute.xlu1 %1843 }
 0x5bb   :  { %v1846_v7 = vunpack.i.h.bf16 %v1844_v29  ;;  %v1845_v10 = vunpack.i.l.bf16 %v1844_v29 }
 0x5bd   :  { %v1739_v16 = vpack.c.bf16 %v1846_v7, %v1845_v10 }
 0x5be   :  { %v731_v4 = vpop.xlane.xlu0 %730 }
 0x5bf   :  { %1872 = vrcp.f32 %v731_v4 }
 0x5c1   :  { %v1867_v5 = vpop.eup %1866 }
 0x5c2   :  { %v1869_v6 = vpop.eup %1868  ;;  %v1839_v8 = vpop.permute.xlu0 %1838  ;;  %v741_v9 = vmul.f32 %v1867_v5, %v1859_v53 }
 0x5c3   :  { %v1841_v11 = vunpack.i.h.bf16 %v1839_v8  ;;  %v1840_v12 = vunpack.i.l.bf16 %v1839_v8  ;;  %v742_v13 = vmul.f32 %v1869_v6, %v1861_v54  ;;  %v1871_v15 = vpop.eup %1870  ;;  %v1490_v6 = vld [vmem:[%s2312_s1 + $0x152] ss:$0 sm:$0xff]  ;;  %v1491_v8 = vld [vmem:[%s2312_s1 + $0x153] ss:$0 sm:$0xff] }
 0x5c4   :  { %v747_v31 = vrot.slane %v741_v9, 2  ;;  %v740_v19 = vmul.f32 %v1871_v15, %v1857_v50  ;;  %v41_v15 = vld [vmem:[%s2312_s1 + $0xd0] sm:$0xff] }
 0x5c5   :  { %v1733_v32 = vpack.c.bf16 %v1841_v11, %v1840_v12  ;;  %v748_v14 = vrot.slane %v742_v13, 2  ;;  %v926_v22 = vrot.slane %v742_v13, 4 }
 0x5c7   :  { %1735 = vmatprep.subr.msk.bf16.mxu1 %vm2159_vm10, %v1733_v32  ;;  %v749_v17 = vsel %vm675_vm8, %v747_v31, %v748_v14  ;;  %v39_v31 = vld [vmem:[%s2312_s1 + $0xc0] sm:$0xff] }
 0x5c8   :  { %1590 = vmatprep.mubr.msk.f32.mxu1 %vm689_vm6, %v749_v17  ;;  %1738 = vmatpush3.bf16.msk.msra.mxu1 %vm2159_vm10, %v1733_v32  ;;  %v40_v32 = vld [vmem:[%s2312_s1 + $0xc8] sm:$0xff] }
 0x5c9   :  { %v1873_v18 = vpop.eup %1872  ;;  %1741 = vmatprep.subr.msk.bf16.mxu1 %vm2159_vm10, %v1739_v16 }
 0x5ca   :  { %v743_v20 = vmul.f32 %v1873_v18, %v1863_v57  ;;  %v80_v57 = vld [vmem:[%s2313_s2 + $0x10] sm:$0xff]  ;;  %v43_v18 = vld [vmem:[%s2312_s1 + $0xe0] sm:$0xff] }
 0x5cb   :  { %1591 = vmatmul.mubr.msk.f32.vlgmr.msra.gmra.mrb[12].mxu1 %vm689_vm6, %v748_v14  ;;  %v1757_v59 = vpack.c.bf16 %v81_v58, %v80_v57  ;;  %v1765_v14 = vpack.c.bf16 %v40_v32, %v39_v31  ;;  %v1495_v31 = vld [vmem:[%s2312_s1 + $0x154] ss:$0 sm:$0xff] }
 0x5cc   :  { %1744 = vmatpush3.bf16.msk.msra.mxu1 %vm2159_vm10, %v1739_v16  ;;  %1597 = vmatprep.mubr.msk.f32.mxu1 %vm689_vm6, %v740_v19  ;;  %v927_v21 = vrot.slane %v743_v20, 4  ;;  %v1014_v36 = vrot.slane %v743_v20, 6  ;;  %v42_v16 = vld [vmem:[%s2312_s1 + $0xd8] sm:$0xff]  ;;  %v44_v19 = vld [vmem:[%s2312_s1 + $0xe8] sm:$0xff] }
 0x5cd   :  { %1747 = vmatprep.subr.msk.bf16.mxu1 %vm2159_vm10, %v2089_v33  ;;  %1766 = vmatprep.subr.bf16.mxu0 %v1765_v14  ;;  %v1769_v17 = vpack.c.bf16 %v42_v16, %v41_v15  ;;  %v1773_v20 = vpack.c.bf16 %v44_v19, %v43_v18 }
 0x5ce   :  { %v928_v23 = vsel %vm667_vm7, %v926_v22, %v927_v21  ;;  %1768 = vmatpush3.bf16.msra.mxu0 %v1765_v14  ;;  %v46_v22 = vld [vmem:[%s2312_s1 + $0xf8] sm:$0xff]  ;;  %v1496_v14 = vld [vmem:[%s2312_s1 + $0x155] ss:$0 sm:$0xff] }
 0x5cf   :  { %1770 = vmatprep.subr.bf16.mxu0 %v1769_v17 }
 0x5d2   :  { %1772 = vmatpush3.bf16.msra.mxu0 %v1769_v17 }
 0x5d3   :  { %1598 = vmatmul.mubr.msk.f32.vlgmr.msra.gmra.mrb[12].mxu1 %vm689_vm6, %v741_v9  ;;  %1774 = vmatprep.subr.bf16.mxu0 %v1773_v20 }
 0x5d4   :  { %1750 = vmatpush3.bf16.msk.msra.mxu1 %vm2159_vm10, %v2089_v33  ;;  %1604 = vmatprep.mubr.msk.f32.mxu1 %vm689_vm6, %v928_v23 }
 0x5d6   :  { %1776 = vmatpush3.bf16.msra.mxu0 %v1773_v20  ;;  %v1499_v20 = vld [vmem:[%s2312_s1 + $0x15c] ss:$0 sm:$0xff] }
 0x5db   :  { %1605 = vmatmul.mubr.msk.f32.vlgmr.msra.gmra.mrb[12].mxu1 %vm689_vm6, %v927_v21  ;;  %v45_v21 = vld [vmem:[%s2312_s1 + $0xf0] sm:$0xff] }
 0x5dc   :  { %v1777_v23 = vpack.c.bf16 %v46_v22, %v45_v21 }
 0x5de   :  { %1778 = vmatprep.subr.bf16.mxu0 %v1777_v23 }
 0x5df   :  { %1780 = vmatpush3.bf16.msra.mxu0 %v1777_v23 }
 0x5eb   :  { %v734_v24 = vpop.xlane.xlu1 %733 }
 0x5ec   :  { %1874 = vrcp.f32 %v734_v24  ;;  %v47_v24 = vld [vmem:[%s2312_s1 + $0x100] sm:$0xff] }
 0x5ef   :  { %v1849_v25 = vpop.permute.xlu1 %1848 }
 0x5f0   :  { %v1851_v26 = vunpack.i.h.bf16 %v1849_v25  ;;  %v1850_v28 = vunpack.i.l.bf16 %v1849_v25  ;;  %v48_v25 = vld [vmem:[%s2312_s1 + $0x108] sm:$0xff] }
 0x5f2   :  { %v1751_v30 = vpack.c.bf16 %v1851_v26, %v1850_v28  ;;  %v49_v26 = vld [vmem:[%s2312_s1 + $0x110] sm:$0xff]  ;;  %v1781_v28 = vpack.c.bf16 %v48_v25, %v47_v24 }
 0x5f4   :  { %1753 = vmatprep.subr.msk.bf16.mxu1 %vm2159_vm10, %v1751_v30  ;;  %1782 = vmatprep.subr.bf16.mxu0 %v1781_v28 }
 0x5f5   :  { %1756 = vmatpush3.bf16.msk.msra.mxu1 %vm2159_vm10, %v1751_v30  ;;  %v50_v30 = vld [vmem:[%s2312_s1 + $0x118] sm:$0xff]  ;;  %1784 = vmatpush3.bf16.msra.mxu0 %v1781_v28 }
 0x5f6   :  { %v1875_v34 = vpop.eup %1874  ;;  %1758 = vmatprep.subr.bf16.mxu1 %v1757_v59 }
 0x5f7   :  { %v744_v35 = vmul.f32 %v1875_v34, %v1865_v62  ;;  %v1761_v62 = vpack.c.bf16 %v83_v61, %v82_v60  ;;  %v1785_v34 = vpack.c.bf16 %v50_v30, %v49_v26 }
 0x5f9   :  { %v1015_v33 = vrot.slane %v744_v35, 6  ;;  %v51_v35 = vld [vmem:[%s2312_s1 + $0x120] sm:$0xff]  ;;  %1786 = vmatprep.subr.bf16.mxu0 %v1785_v34 }
 0x5fa   :  { %1788 = vmatpush3.bf16.msra.mxu0 %v1785_v34 }
 0x5fb   :  { %v1016_v37 = vsel %vm165_vm1, %v1014_v36, %v1015_v33  ;;  %v52_v36 = vld [vmem:[%s2312_s1 + $0x128] sm:$0xff] }
 0x5fc   :  { %1611 = vmatprep.mubr.msk.f32.mxu1 %vm689_vm6, %v1016_v37  ;;  %v53_v37 = vld [vmem:[%s2312_s1 + $0x130] sm:$0xff] }
 0x5fd   :  { %1612 = vmatmul.mubr.msk.f32.vlgmr.msra.gmra.mrb[12].mxu1 %vm689_vm6, %v1015_v33  ;;  %v1789_v33 = vpack.c.bf16 %v52_v36, %v51_v35 }
 0x5fe   :  { %1760 = vmatpush3.bf16.msra.mxu1 %v1757_v59 }
 0x5ff   :  { %1762 = vmatprep.subr.bf16.mxu1 %v1761_v62  ;;  %1790 = vmatprep.subr.bf16.mxu0 %v1789_v33 }
 0x600   :  { %1792 = vmatpush3.bf16.msra.mxu0 %v1789_v33 }
 0x602   :  { %1764 = vmatpush3.bf16.msra.mxu1 %v1761_v62 }
 0x603   :  { %1660 = vmatprep.subr.mxu1 %v1911_v2 }
 0x6d0   :  { %v1613_v38 = vpop.f32.mrb[12].mxu1 }
 0x6d1   :  { %v1107_v40 = vadd.f32 %v1613_v38, %v2031_v46  ;;  %v1095_v41 = vpop.f32.mrb[13].mxu1  ;;  %v54_v38 = vld [vmem:[%s2312_s1 + $0x138] sm:$0xff] }
 0x6d2   :  { %v1106_v42 = vadd.f32 %v1095_v41, %v2029_v45 }
 0x6d3   :  { %v1113_v43 = vadd.f32 %v1489_v39, %v1107_v40  ;;  %v85_v40 = vld [vmem:[%s2313_s2 + $0x61] ss:$0 sm:$0xff] }
 0x6d4   :  { %v2197_v44 = vadd.f32 %v1489_v39, %v1106_v42  ;;  %v1793_v39 = vpack.c.bf16 %v54_v38, %v53_v37 }
 0x6d5   :  { %v1117_v47 = vsel %vm173_vm3, %v1113_v43, 0.0 }
 0x6d6   :  { %1118 = vadd.xlane.f32.xlu0 %v1117_v47  ;;  %v1114_v48 = vsel %vm169_vm2, %v2197_v44, 0.0  ;;  %1794 = vmatprep.subr.bf16.mxu0 %v1793_v39 }
 0x6d7   :  { %1115 = vadd.xlane.f32.xlu1 %v1114_v48  ;;  %1796 = vmatpush3.bf16.msra.mxu0 %v1793_v39 }
 0x763   :  { %v1119_v49 = vpop.xlane.xlu0 %1118 }
 0x764   :  { %v1121_v50 = vmul.f32 0.03125, %v1119_v49  ;;  %v1116_v51 = vpop.xlane.xlu1 %1115 }
 0x765   :  { %v1120_v52 = vmul.f32 0.03125, %v1116_v51 }
 0x766   :  { %v1123_v53 = vsub.f32 %v1113_v43, %v1121_v50 }
 0x767   :  { %v1122_v46 = vsub.f32 %v2197_v44, %v1120_v52 }
 0x768   :  { %v1125_v55 = vmul.f32 %v1123_v53, %v1123_v53 }
 0x769   :  { %v1124_v54 = vmul.f32 %v1122_v46, %v1122_v46 }
 0x76a   :  { %v1129_v56 = vsel %vm173_vm3, %v1125_v55, 0.0 }
 0x76b   :  { %v1126_v45 = vsel %vm169_vm2, %v1124_v54, 0.0 }
 0x76c   :  { %1127 = vadd.xlane.f32.xlu0 %v1126_v45 }
 0x770   :  { %1130 = vadd.xlane.f32.xlu0 %v1129_v56 }
 0x7f9   :  { %v1128_v63 = vpop.xlane.xlu0 %1127 }
 0x7fa   :  { %v1132_v0 = vmul.f32 0.03125, %v1128_v63 }
 0x7fc   :  { %v1134_v1 = vadd.f32 1e-06, %v1132_v0  ;;  %v1494_v0 = vld [vmem:[%s2312_s1 + $0x157] ss:$0 sm:$0xff] }
 0x7fd   :  { %v1131_v3 = vpop.xlane.xlu0 %1130 }
 0x7fe   :  { %1876 = vrsqrt.f32 %v1134_v1  ;;  %v1133_v4 = vmul.f32 0.03125, %v1131_v3 }
 0x800   :  { %v1135_v29 = vadd.f32 1e-06, %v1133_v4 }
 0x802   :  { %1878 = vrsqrt.f32 %v1135_v29 }
 0x808   :  { %v1877_v5 = vpop.eup %1876 }
 0x809   :  { %v1138_v7 = vmul.f32 %v1877_v5, %v1122_v46 }
 0x80b   :  { %v1144_v9 = vmul.f32 %v1490_v6, %v1138_v7 }
 0x80c   :  { %v1879_v10 = vpop.eup %1878 }
 0x80d   :  { %v1139_v11 = vmul.f32 %v1879_v10, %v1123_v53  ;;  %v1150_v12 = vadd.f32 %v1491_v8, %v1144_v9 }
 0x80f   :  { %v1145_v13 = vmul.f32 %v1490_v6, %v1139_v11  ;;  %1622 = vmatprep.mubr.msk.f32.mxu1 %vm169_vm2, %v1150_v12  ;;  %v65_v11 = vld [vmem:[%s2312_s1 + $0x158] sm:$0xf] }
 0x811   :  { %v1151_v27 = vadd.f32 %v1491_v8, %v1145_v13 }
 0x813   :  { %1623 = vmatmul.mubr.msk.f32.vlgmr.msra.gmra.mrb[14].mxu1 %vm169_vm2, %v1151_v27 }
 0x814   :  { %1661 = vmatpush3.xpose.msk.msra.mxu1 %vm169_vm2, %v65_v11  ;;  %1662 = vmatprep.mubr.msk.f32.mxu1 %vm1922_vm11, %v1911_v2 }
 0x8e6   :  { %v1624_v41 = vpop.f32.mrb[14].mxu1 }
 0x8e7   :  { %v1230_v42 = vadd.f32 %v1624_v41, %v85_v40  ;;  %v1224_v43 = vpop.f32.mrb[15].mxu1 }
 0x8e8   :  { %v1225_v47 = vadd.f32 %v1224_v43, %v85_v40 }
 0x8e9   :  { %v1234_v48 = vmul.f32 %v1230_v42, %v1230_v42 }
 0x8ea   :  { %v1233_v49 = vmul.f32 %v1225_v47, %v1225_v47 }
 0x8eb   :  { %v1236_v50 = vmul.f32 %v1234_v48, %v1230_v42 }
 0x8ec   :  { %v1235_v51 = vmul.f32 %v1233_v49, %v1225_v47 }
 0x8ed   :  { %v1238_v52 = vmul.f32 0.044715, %v1236_v50 }
 0x8ee   :  { %v1237_v53 = vmul.f32 0.044715, %v1235_v51 }
 0x8ef   :  { %v1240_v46 = vadd.f32 %v1238_v52, %v1230_v42 }
 0x8f0   :  { %v1239_v54 = vadd.f32 %v1237_v53, %v1225_v47 }
 0x8f1   :  { %v1242_v45 = vmul.f32 0.7978846, %v1240_v46 }
 0x8f2   :  { %v1241_v55 = vmul.f32 0.7978846, %v1239_v54 }
 0x8f3   :  { %1880 = vtanh.f32 %v1242_v45 }
 0x8f4   :  { %1882 = vtanh.f32 %v1241_v55 }
 0x8fd   :  { %v1881_v56 = vpop.eup %1880 }
 0x8fe   :  { %v1883_v57 = vpop.eup %1882  ;;  %v1246_v58 = vadd.f32 1.0, %v1881_v56 }
 0x8ff   :  { %v1245_v59 = vadd.f32 1.0, %v1883_v57 }
 0x900   :  { %v1248_v60 = vmul.f32 0.5, %v1246_v58 }
 0x901   :  { %v1247_v61 = vmul.f32 0.5, %v1245_v59 }
 0x902   :  { %v1250_v63 = vmul.f32 %v1248_v60, %v1230_v42 }
 0x903   :  { %v1249_v62 = vmul.f32 %v1247_v61, %v1225_v47 }
 0x905   :  { %1657 = vmatprep.mubr.f32.mxu0 %v1249_v62 }
 0x906   :  { %1658 = vmatmul.mubr.f32.vlgmr.msra.gmra.mrb[2].mxu0 %v1250_v63 }
 0x9d9   :  { %v1659_v1 = vpop.f32.mrb[2].mxu0 }
 0x9da   :  { %v1321_v3 = vpop.f32.mrb[3].mxu0 }
 0x9db   :  { %v1322_v4 = vadd.f32 %v1494_v0, %v1321_v3 }
 0x9dd   :  { %v1329_v29 = vadd.f32 %v1322_v4, %v2197_v44 }
 0x9df   :  { %v1330_v5 = vsel %vm173_vm3, %v1329_v29, 0.0 }
 0x9e0   :  { %1331 = vadd.xlane.f32.xlu1 %v1330_v5 }
 0xa6d   :  { %v1332_v6 = vpop.xlane.xlu1 %1331 }
 0xa6e   :  { %v1333_v7 = vmul.f32 0.03125, %v1332_v6 }
 0xa70   :  { %v1334_v8 = vsub.f32 %v1329_v29, %v1333_v7 }
 0xa72   :  { %v1335_v9 = vmul.f32 %v1334_v8, %v1334_v8 }
 0xa74   :  { %v1336_v10 = vsel %vm173_vm3, %v1335_v9, 0.0 }
 0xa75   :  { %1337 = vadd.xlane.f32.xlu0 %v1336_v10 }
 0xb02   :  { %v1338_v44 = vpop.xlane.xlu0 %1337 }
 0xb03   :  { %v1339_v12 = vmul.f32 0.03125, %v1338_v44 }
 0xb05   :  { %v1340_v13 = vadd.f32 1e-06, %v1339_v12 }
 0xb07   :  { %1884 = vrsqrt.f32 %v1340_v13 }
 0xb11   :  { %v1885_v27 = vpop.eup %1884 }
 0xb12   :  { %v1342_v32 = vmul.f32 %v1885_v27, %v1334_v8 }
 0xb14   :  { %v1347_v15 = vmul.f32 %v1495_v31, %v1342_v32 }
 0xb16   :  { %v1352_v16 = vadd.f32 %v1496_v14, %v1347_v15 }
 0xb18   :  { %1663 = vmatmul.mubr.msk.f32.vlgmr.msra.gmra.mrb[16].mxu1 %vm169_vm2, %v1352_v16  ;;  %v1429_v17 = vmul.f32 %v1352_v16, %v1352_v16 }
 0xb1a   :  { %v1430_v2 = vsel %vm173_vm3, %v1429_v17, 0.0 }
 0xb1b   :  { %1431 = vadd.xlane.f32.xlu1 %v1430_v2 }
 0xba8   :  { %v1432_v18 = vpop.xlane.xlu1 %1431 }
 0xba9   :  { %v1433_v19 = vmul.f32 0.03125, %v1432_v18 }
 0xbab   :  { %v1438_v21 = vadd.f32 %v1499_v20, %v1433_v19 }
 0xbeb   :  { %v1425_v22 = vpop.f32.mrb[16].mxu1 }
 0xbec   :  { %v1439_v23 = vsub.f32 %v1438_v21, %v1425_v22  ;;  %v1664_v24 = vpop.f32.mrb[17].mxu1 }
 0xbee   :  { %1441 = vst.msk [vmem:[#allocation2] sm:$0x3] %vm1440_vm12, %v1439_v23 }
 0xbef   :  { %1897 = shalt.err (!%p1894_p4)
}
 0xbf0   :  { %s1898_s1 = scalar_lea.hbm %s2314_s3, 32 }
 0xbf1   :  { %p1899_p5 = scmp.ne.s32.totalorder %s2314_s3, %s1898_s1  ;;  %p1902_p6 = scmp.lt.u32.totalorder %s1898_s1, %s2314_s3 }
 0xbf3   :  { %p1904_p7 = pnand %p1902_p6, %p1899_p5 }
 0xbf5   :  { %1907 = shalt.err (!%p1904_p7)
}
 0xbf6   :  { %1451 = dma.vmem_to_hbm [thread:$0]  %s1449_s28, 32, %s2314_s3, [#allocation3]  }
 0xbf7   :  { %1908 = dma.done.wait [#allocation3], 32  }
 0xbf8   :  { %1909 = vsyncadd [#allocation3], 4294967264 }
 0xbf9   :  { %1455 = vsyncpa [#allocation3], 1 }

</bundles_post_ra>
